<compile_context>
chip_gen: v7x
topology: tpu7x:2x2x1
jax: 0.10.0
libtpu: 0.0.40
codegen_flags: <defaults>
</compile_context>

<pallas_src>
import math

import jax
import jax.numpy as jnp
from jax.experimental import pallas as pl
from jax.experimental.pallas import tpu as pltpu


def _make_pe(d_model: int, max_len: int = 5000) -> jnp.ndarray:
    """Sinusoidal positional-encoding table (max_len, d_model); matches the
    PyTorch __init__ buffer construction."""
    assert d_model % 2 == 0, "d_model must be even (same limitation as the PyTorch module)"
    position = jnp.arange(0, max_len, dtype=jnp.float32)[:, None]              # (L, 1)
    div_term = jnp.exp(
        jnp.arange(0, d_model, 2, dtype=jnp.float32) * (-math.log(10000.0) / d_model)
    )                                                                           # (D/2,)
    angles = position * div_term                                                # (L, D/2)
    pe = jnp.zeros((max_len, d_model), dtype=jnp.float32)
    pe = pe.at[:, 0::2].set(jnp.sin(angles))
    pe = pe.at[:, 1::2].set(jnp.cos(angles))
    return pe                                                                   # (L, D)


def _add_kernel(x_ref, pe_ref, o_ref):
    # Flat path:  x (TB, TC)      + pe (1, TC)   -> leading-dim broadcast.
    # 3-D  path:  x (TB, TS, D)   + pe (TS, D)   -> leading-dim broadcast.
    # Explicit cast covers bf16 x + f32 pe (result stays in x's dtype).
    o_ref[...] = (x_ref[...] + pe_ref[...]).astype(o_ref.dtype)


def _sublane_pack(itemsize: int) -> int:
    # Natural sublane pack: 8 for f32, 16 for bf16, 32 for int8/fp8.
    return max(8, 32 // max(1, itemsize))


def _choose_tiles_flat(B: int, C: int, itemsize: int, budget_bytes: int):
    """Tiles for the flattened (B, C) view (requires C % 128 == 0).

    Per perf review: pick TB first, then TC = largest multiple of 128 that
    fills the remaining budget, so small-B shapes use the whole budget.
    """
    pack = _sublane_pack(itemsize)
    budget_elems = max(128, budget_bytes // itemsize)

    rows_cap = budget_elems // C
    if rows_cap >= B:
        TB = B                                            # full extent (always legal)
    else:
        TB = min(B, max(pack, (rows_cap // pack) * pack))  # sublane-pack aligned

    lanes_cap = max(128, (budget_elems // TB) // 128 * 128)
    if lanes_cap >= C:
        TC = C
    else:
        n_c = pl.cdiv(C // 128, lanes_cap // 128)          # number of near-even C tiles
        TC = pl.cdiv(C // 128, n_c) * 128                  # TC <= lanes_cap, multiple of 128

    # v7x has 2 TensorCores: guarantee >= 2 blocks for multi-MiB inputs.
    if (pl.cdiv(B, TB) * pl.cdiv(C, TC) == 1) and (B * C * itemsize >= (1 << 20)) and C >= 256:
        TC = pl.cdiv(C // 128, 2) * 128
    return TB, TC


def _choose_tiles_3d(B: int, S: int, D: int, itemsize: int, budget_bytes: int):
    """Fallback tiling on (B, S, D) when S*D is not a multiple of 128.
    Block is (TB, TS, D); D is the full lane dim (legal for any D), TS is a
    multiple of the sublane pack or the full S.  Never exceeds the budget by
    more than one minimal block."""
    pack = _sublane_pack(itemsize)
    budget_elems = max(1, budget_bytes // itemsize)
    rows_cap = max(1, budget_elems // D)                   # (b, s) rows per tile
    if rows_cap >= S:
        TS = S
        TB = min(B, max(1, rows_cap // S))
    else:
        TB = 1
        TS = min(S, max(pack, (rows_cap // pack) * pack))
    # >= 2 blocks for multi-MiB inputs (v7x dual TensorCore).
    if (pl.cdiv(B, TB) * pl.cdiv(S, TS) == 1) and (B * S * D * itemsize >= (1 << 20)) and S >= 2 * pack:
        TS = max(pack, (pl.cdiv(S, 2) // pack) * pack)
    return TB, TS


def _vmem_limit(x_tile_bytes: int, pe_tile_bytes: int) -> int:
    # Double-buffered x-in + out + pe, plus headroom; capped at 48 MiB so it is
    # safe on v7x's 64 MiB physical VMEM (and well under v5e/v6e's 128 MiB).
    footprint = 4 * x_tile_bytes + 2 * pe_tile_bytes + (8 << 20)
    return int(min(48 << 20, max(32 << 20, footprint)))


def make_positional_encoding(d_model: int, max_len: int = 5000, pe_dtype=jnp.float32):
    """Builds the pe buffer once (like the PyTorch module's register_buffer) and
    returns forward(x) -> x + pe[:, :S].  No per-call pe slice/reshape."""
    pe_table = _make_pe(d_model, max_len).astype(pe_dtype)          # (L, D)
    pe_row = pe_table.reshape(1, max_len * d_model)                 # (1, L*D), init-time only
    pe_itemsize = jnp.dtype(pe_dtype).itemsize

    def forward(x: jnp.ndarray, *, tile_budget_bytes: int = 4 << 20) -> jnp.ndarray:
        B, S, D = x.shape
        assert D == d_model, f"d_model mismatch: {D} vs {d_model}"
        assert S <= max_len, f"sequence length {S} exceeds max_len {max_len}"
        x_itemsize = jnp.dtype(x.dtype).itemsize
        C = S * D

        if C % 128 == 0:
            # ---- Fast path: flattened (B, C), lane-dense unmasked stores ----
            TB, TC = _choose_tiles_flat(B, C, x_itemsize, tile_budget_bytes)
            grid = (pl.cdiv(C, TC), pl.cdiv(B, TB))   # C outer -> pe block fixed over inner B loop
            out_flat = pl.pallas_call(
                _add_kernel,
                out_shape=jax.ShapeDtypeStruct((B, C), x.dtype),
                grid_spec=pltpu.PrefetchScalarGridSpec(
                    num_scalar_prefetch=0,
                    grid=grid,
                    in_specs=[
                        pl.BlockSpec((TB, TC), lambda c, b: (b, c)),   # x
                        pl.BlockSpec((1, TC), lambda c, b: (0, c)),    # pe (B-invariant, prefix of table)
                    ],
                    out_specs=pl.BlockSpec((TB, TC), lambda c, b: (b, c)),
                ),
                compiler_params=pltpu.CompilerParams(
                    dimension_semantics=("parallel", "parallel"),
                    vmem_limit_bytes=_vmem_limit(TB * TC * x_itemsize, TC * pe_itemsize),
                ),
            )(x.reshape(B, C), pe_row)
            return out_flat.reshape(B, S, D)

        # ---- Fallback: S*D not a multiple of 128 -> tile (B, S, D) directly ----
        # (masked edge stores are inherent to the shape; budget is still respected)
        TB, TS = _choose_tiles_3d(B, S, D, x_itemsize, tile_budget_bytes)
        grid = (pl.cdiv(S, TS), pl.cdiv(B, TB))
        return pl.pallas_call(
            _add_kernel,
            out_shape=jax.ShapeDtypeStruct((B, S, D), x.dtype),
            grid_spec=pltpu.PrefetchScalarGridSpec(
                num_scalar_prefetch=0,
                grid=grid,
                in_specs=[
                    pl.BlockSpec((TB, TS, D), lambda s, b: (b, s, 0)),   # x
                    pl.BlockSpec((TS, D), lambda s, b: (s, 0)),          # pe (B-invariant)
                ],
                out_specs=pl.BlockSpec((TB, TS, D), lambda s, b: (b, s, 0)),
            ),
            compiler_params=pltpu.CompilerParams(
                dimension_semantics=("parallel", "parallel"),
                vmem_limit_bytes=_vmem_limit(TB * TS * D * x_itemsize, TS * D * pe_itemsize),
            ),
        )(x, pe_table)

    return forward


if __name__ == "__main__":
    key = jax.random.PRNGKey(0)
    k1, k2, k3, k4 = jax.random.split(key, 4)

    # --- Case 1: demo shape implied by the module (batch=2, seq=8, d_model=32), f32.
    B, S, D = 2, 8, 32
    pe_fwd = make_positional_encoding(D, max_len=5000)
    x = jax.random.normal(k1, (B, S, D), dtype=jnp.float32)
    out = jax.block_until_ready(pe_fwd(x))
    ref = x + _make_pe(D, 5000)[None, :S, :]
    assert out.shape == (B, S, D) and out.dtype == x.dtype
    assert jnp.allclose(out, ref, atol=1e-6), "mismatch vs reference (case 1)"

    # --- Case 2: multi-tile grid on the flattened path (tiny budget forces C x B tiling).
    B2, S2, D2 = 16, 256, 128
    pe_fwd2 = make_positional_encoding(D2, max_len=512)
    x2 = jax.random.normal(k2, (B2, S2, D2), dtype=jnp.float32)
    out2 = jax.block_until_ready(pe_fwd2(x2, tile_budget_bytes=64 * 1024))
    ref2 = x2 + _make_pe(D2, 512)[None, :S2, :]
    assert jnp.allclose(out2, ref2, atol=1e-6), "mismatch vs reference (case 2)"

    # --- Case 3: bf16 activations + f32 pe buffer.  Output stays bf16 (documented
    # deviation from PyTorch's f32 type promotion); tiles are sized with the bf16
    # itemsize so they are 2x larger than before for the same budget.
    B3, S3, D3 = 4, 128, 64
    pe_fwd3 = make_positional_encoding(D3, max_len=256)
    x3 = jax.random.normal(k3, (B3, S3, D3), dtype=jnp.bfloat16)
    out3 = jax.block_until_ready(pe_fwd3(x3))
    ref3 = (x3.astype(jnp.float32) + _make_pe(D3, 256)[None, :S3, :]).astype(jnp.bfloat16)
    assert out3.dtype == jnp.bfloat16
    assert jnp.allclose(out3.astype(jnp.float32), ref3.astype(jnp.float32), atol=1e-6), \
        "mismatch vs reference (case 3)"

    # --- Case 4: S*D not a multiple of 128 -> exercises the (B, S, D) fallback tiler.
    B4, S4, D4 = 3, 10, 20
    pe_fwd4 = make_positional_encoding(D4, max_len=64)
    x4 = jax.random.normal(k4, (B4, S4, D4), dtype=jnp.float32)
    out4 = jax.block_until_ready(pe_fwd4(x4))
    ref4 = x4 + _make_pe(D4, 64)[None, :S4, :]
    assert jnp.allclose(out4, ref4, atol=1e-6), "mismatch vs reference (case 4)"

    print("KERNEL_OK")
</pallas_src>

<mosaic_0001>
module attributes {stable_mosaic.version = 11 : i64} {
  func.func @_add_kernel(%arg0: i32, %arg1: i32, %arg2: memref<2x256xf32, #tpu.memory_space<vmem>>, %arg3: memref<1x256xf32, #tpu.memory_space<vmem>>, %arg4: memref<2x256xf32, #tpu.memory_space<vmem>>) attributes {dimension_semantics = [#tpu.dimension_semantics<parallel>, #tpu.dimension_semantics<parallel>], iteration_bounds = array<i64: 1, 1>, scalar_prefetch = 0 : i64, scratch_operands = 0 : i64, tpu.core_type = #tpu.core_type<tc>, window_params = [{transform_indices = @transform_0, window_bounds = array<i64: 2, 256>}, {transform_indices = @transform_1, window_bounds = array<i64: 1, 256>}, {transform_indices = @transform_2, window_bounds = array<i64: 2, 256>}]} {
    %c0 = arith.constant 0 : index
    %c0_0 = arith.constant 0 : index
    %0 = vector.load %arg2[%c0, %c0_0] : memref<2x256xf32, #tpu.memory_space<vmem>>, vector<2x256xf32>
    %c0_1 = arith.constant 0 : index
    %c0_2 = arith.constant 0 : index
    %1 = vector.load %arg3[%c0_1, %c0_2] : memref<1x256xf32, #tpu.memory_space<vmem>>, vector<1x256xf32>
    %2 = vector.broadcast %1 : vector<1x256xf32> to vector<2x256xf32>
    %3 = arith.addf %0, %2 : vector<2x256xf32>
    %c0_3 = arith.constant 0 : index
    %c0_4 = arith.constant 0 : index
    %4 = vector.load %arg4[%c0_3, %c0_4] : memref<2x256xf32, #tpu.memory_space<vmem>>, vector<2x256xf32>
    tpu.vector_store %arg4[%c0_3, %c0_4], %3 {strides = array<i32>} : memref<2x256xf32, #tpu.memory_space<vmem>>, vector<2x256xf32>,
    return
  }
  func.func @transform_0(%arg0: i32, %arg1: i32) -> (i32, i32) {
    %c0_i32 = arith.constant 0 : i32
    return %arg1, %arg0 : i32, i32
  }
  func.func @transform_1(%arg0: i32, %arg1: i32) -> (i32, i32) {
    %c0_i32 = arith.constant 0 : i32
    %c0_i32_0 = arith.constant 0 : i32
    return %c0_i32, %arg0 : i32, i32
  }
  func.func @transform_2(%arg0: i32, %arg1: i32) -> (i32, i32) {
    %c0_i32 = arith.constant 0 : i32
    return %arg1, %arg0 : i32, i32
  }
}

</mosaic_0001>

<bundles_post_ra>
// kernel: tpu_custom_call.1
= control target key start
LH: loop header
LB: loop body
LE: loop exit
PB: predicated region body
PF: predicated region fallthrough
CT: control target
= control target key end

     0   :  { %7 = vsyncpa [#allocation3], 0  ;;  %s215_s0 = inlined_call_operand.hbm [shape: f32[2,256], index: 0, kind: input, shape index: {}]   ;;  %s216_s1 = inlined_call_operand.hbm [shape: f32[1,160000], index: 1, kind: input, shape index: {}]   ;;  %s217_s2 = inlined_call_operand.hbm [shape: f32[2,256], index: 2, kind: output, shape index: {}]  }
   0x1   :  { %8 = vsyncpa [#allocation6], 0 }
   0x2   :  { %9 = vsyncpa [#allocation4], 0  ;;  %s150_s9 = smov [#allocation2]   ;;  %s151_s11 = smov [#allocation5]  }
   0x3   :  { %s16_s10 = sshll.u32 %s150_s9, 4  ;;  %s26_s12 = sshll.u32 %s151_s11, 4  ;;  %s17_s10 = int_to_ptr.vmem [resolvable:$true] %s16_s10  ;;  %s169_s12 = int_to_ptr.vmem [resolvable:$true] %s26_s12 }
   0x4   :  { %s78_s15 = scalar_lea.hbm %s215_s0, 64 }
   0x5   :  { %p79_p0 = scmp.ne.s32.totalorder %s215_s0, %s78_s15  ;;  %p82_p1 = scmp.lt.u32.totalorder %s78_s15, %s215_s0 }
   0x7   :  { %p84_p2 = pnand %p82_p1, %p79_p0 }
   0x9   :  { %87 = shalt.err (!%p84_p2)
}
   0xa   :  { %s88_s20 = scalar_lea.vmem %s17_s10, 64  ;;  %p93_p4 = scmp.lt.s32.totalorder %s17_s10, %s17_s10 }
   0xb   :  { %p89_p3 = scmp.ne.s32.totalorder %s17_s10, %s88_s20  ;;  %p94_p5 = scmp.lt.s32.totalorder %s88_s20, %s88_s20 }
   0xd   :  { %p95_p6 = por %p94_p5, %p93_p4 }
   0xf   :  { %p96_p7 = pnand %p95_p6, %p89_p3 }
  0x11   :  { %99 = shalt.err (!%p96_p7)
}
  0x12   :  { %19 = dma.hbm_to_vmem [thread:$0]  %s215_s0, 64, %s17_s10, [#allocation3]  }
  0x13   :  { %s100_s25 = scalar_lea.hbm %s216_s1, 32  ;;  %s102_s30 = scalar_lea.hbm %s216_s1, 20000 }
  0x14   :  { %p101_p8 = scmp.ne.s32.totalorder %s216_s1, %s100_s25  ;;  %p103_p9 = scmp.lt.u32.totalorder %s102_s30, %s100_s25 }
  0x15   :  { %p104_p10 = scmp.lt.u32.totalorder %s100_s25, %s216_s1 }
  0x17   :  { %p105_p11 = por %p104_p10, %p103_p9 }
  0x19   :  { %p106_p12 = pnand %p105_p11, %p101_p8 }
  0x1b   :  { %109 = shalt.err (!%p106_p12)
}
  0x1c   :  { %s110_s0 = scalar_lea.vmem %s169_s12, 32  ;;  %p115_p0 = scmp.lt.s32.totalorder %s169_s12, %s169_s12 }
  0x1d   :  { %p111_p13 = scmp.ne.s32.totalorder %s169_s12, %s110_s0  ;;  %p116_p1 = scmp.lt.s32.totalorder %s110_s0, %s110_s0 }
  0x1f   :  { %p117_p2 = por %p116_p1, %p115_p0 }
  0x21   :  { %p118_p3 = pnand %p117_p2, %p111_p13 }
  0x23   :  { %121 = shalt.err (!%p118_p3)
}
  0x24   :  { %29 = dma.hbm_to_vmem [thread:$0]  %s216_s1, 32, %s169_s12, [#allocation6]  }
  0x25   :  { %144 = dma.done.wait [#allocation3], 64  }
  0x26   :  { %145 = vsyncadd [#allocation3], 4294967232 }
  0x27   :  { %146 = dma.done.wait [#allocation6], 32  }
  0x28   :  { %147 = vsyncadd [#allocation6], 4294967264  ;;  %v39_v0 = vlaneseq  ;;  %v152_v1 = vmov 1983009808   ;;  %v37_v7 = vld [vmem:[#allocation5] sm:$0x3] }
  0x29   :  { %v49_v2 = vunpack.c.l.s4 %v152_v1  ;;  %v36_v12 = vld [vmem:[#allocation2] sm:$0xf]  ;;  %s153_s7 = smov [#allocation7]  }
  0x2a   :  { %v40_v3 = vshrl.u32 %v39_v0, 7  ;;  %s64_s8 = sshll.u32 %s153_s7, 4  ;;  %s65_s8 = int_to_ptr.vmem [resolvable:$true] %s64_s8 }
  0x2b   :  { %v50_v6 = vunpack.c.0.s8 %v49_v2  ;;  %s122_s1 = scalar_lea.vmem %s65_s8, 64  ;;  %p127_p5 = scmp.lt.s32.totalorder %s65_s8, %s65_s8 }
  0x2c   :  { %v41_v4 = vsub.s32 0, %v40_v3  ;;  %v45_v5 = vsub.s32 1, %v40_v3  ;;  %p123_p4 = scmp.ne.s32.totalorder %s65_s8, %s122_s1  ;;  %p128_p6 = scmp.lt.s32.totalorder %s122_s1, %s122_s1 }
  0x2d   :  { %v53_v10 = vsub.s32 %v50_v6, %v40_v3 }
  0x2e   :  { %v42_v8 = vrot.slane %v37_v7, %v41_v4  ;;  %v46_v9 = vrot.slane %v37_v7, %v45_v5  ;;  %p129_p7 = por %p128_p6, %p127_p5 }
  0x30   :  { %v47_v11 = vcombine.low %v42_v8, %v46_v9  ;;  %p130_p8 = pnand %p129_p7, %p123_p4 }
  0x32   :  { %v54_v13 = vrot.slane %v47_v11, %v53_v10 }
  0x34   :  { %v56_v14 = vadd.f32 %v54_v13, %v36_v12 }
  0x36   :  { %57 = vst [vmem:[#allocation7] sm:$0xf] %v56_v14 }
  0x37   :  { %133 = shalt.err (!%p130_p8)
}
  0x38   :  { %s134_s11 = scalar_lea.hbm %s217_s2, 64 }
  0x39   :  { %p135_p9 = scmp.ne.s32.totalorder %s217_s2, %s134_s11  ;;  %p138_p10 = scmp.lt.u32.totalorder %s134_s11, %s217_s2 }
  0x3b   :  { %p140_p11 = pnand %p138_p10, %p135_p9 }
  0x3d   :  { %143 = shalt.err (!%p140_p11)
}
  0x3e   :  { %67 = dma.vmem_to_hbm [thread:$0]  %s65_s8, 64, %s217_s2, [#allocation4]  }
  0x3f   :  { %148 = dma.done.wait [#allocation4], 64  }
  0x40   :  { %149 = vsyncadd [#allocation4], 4294967232 }
  0x41   :  { %71 = vsyncpa [#allocation3], 1 }
  0x42   :  { %72 = vsyncpa [#allocation6], 1 }
  0x43   :  { %73 = vsyncpa [#allocation4], 1 }

</bundles_post_ra>
